<compile_context>
chip_gen: v5e
topology: v5e:2x2
jax: 0.10.0
libtpu: 0.0.40
codegen_flags: <defaults>
</compile_context>

<pallas_src>
import jax
import jax.numpy as jnp
from jax.experimental import pallas as pl
from jax.experimental.pallas import tpu as pltpu


def mlp_kernel(x_ref, w1_ref, w23_ref, w4_ref, b_ref, o_ref):
    # x_ref:   (8, TILE_B)  bf16 -- 7 input features zero-padded to 8 sublanes,
    #                               batch on the lane axis.
    # w1_ref:  (64, 8)      bf16
    # w23_ref: (2, 64, 64)  bf16 -- [W2, W3]
    # w4_ref:  (8, 64)      bf16 -- head weights in row 0, rows 1..7 zero
    # b_ref:   (4, 64, 1)   f32  -- [b1, b2, b3, b4 (broadcast down the column)]
    x = x_ref[...]

    # Layer 1: (64, 8) @ (8, TILE_B) -> (64, TILE_B), bf16 in / f32 accumulate.
    h = jnp.dot(w1_ref[...], x, preferred_element_type=jnp.float32)
    h = jnp.maximum(h + b_ref[0], 0.0)                      # f32 bias + ReLU

    # Layer 2: (64, 64) @ (64, TILE_B)
    h = jnp.dot(w23_ref[0], h.astype(jnp.bfloat16),
                preferred_element_type=jnp.float32)
    h = jnp.maximum(h + b_ref[1], 0.0)

    # Layer 3: (64, 64) @ (64, TILE_B)
    h = jnp.dot(w23_ref[1], h.astype(jnp.bfloat16),
                preferred_element_type=jnp.float32)
    h = jnp.maximum(h + b_ref[2], 0.0)

    # Head 64 -> 1 on the MXU (LHS padded to 8 rows for sublane alignment);
    # only row 0 carries the real projection. Output stays lane-dense (1, TILE_B).
    h4 = jnp.dot(w4_ref[...], h.astype(jnp.bfloat16),
                 preferred_element_type=jnp.float32)         # (8, TILE_B)
    o_ref[...] = (h4[0:1, :] + b_ref[3, 0:1, :]).astype(o_ref.dtype)


def _pack_params(params):
    """Pack torch-convention params (W: (out,in), b: (out,)) for the kernel."""
    (w1, b1), (w2, b2), (w3, b3), (w4, b4) = params
    # W1's 7-wide contraction is zero-padded to 8 so K is sublane-aligned.
    w1p = jnp.zeros((64, 8), jnp.bfloat16).at[:, :7].set(w1.astype(jnp.bfloat16))
    w23p = jnp.stack([w2, w3]).astype(jnp.bfloat16)                   # (2, 64, 64)
    # Head weights in row 0 of an 8-row slab (rows 1..7 zero) -> MXU-friendly.
    w4p = jnp.zeros((8, 64), jnp.bfloat16).at[0:1, :].set(w4.astype(jnp.bfloat16))
    bslab = jnp.stack([
        b1.reshape(64, 1),
        b2.reshape(64, 1),
        b3.reshape(64, 1),
        jnp.broadcast_to(b4.reshape(1, 1), (64, 1)),
    ]).astype(jnp.float32)                                            # (4, 64, 1)
    return w1p, w23p, w4p, bslab


def mlp_forward(x, params, tile_b=8192):
    """x: (B, 7) f32 -> (B, 1) f32.

    tile_b: batch (lane) tile, multiple of 128.  Keep it large (4096-8192) for
    production batches so each grid step amortizes the ~0.35 us step overhead;
    VMEM per step is only a few MiB even at 8192, safe on v7x's 64 MiB.
    """
    B, F = x.shape
    assert F == 7
    w1p, w23p, w4p, bslab = _pack_params(params)

    # Clamp tile to the lane-rounded batch, multiple of 128.
    b_lane = ((B + 127) // 128) * 128
    tile_b = max(128, (min(tile_b, b_lane) // 128) * 128)
    b_pad = ((B + tile_b - 1) // tile_b) * tile_b
    # v7x megacore guard: ensure >= 2 grid steps when the batch allows it so
    # dimension_semantics=("parallel",) can shard across both TensorCores.
    if b_pad // tile_b < 2 and b_pad >= 256:
        tile_b = max(128, ((b_pad // 2) // 128) * 128)
        b_pad = ((B + tile_b - 1) // tile_b) * tile_b
    grid = (b_pad // tile_b,)

    # Single fused cast + transpose + pad: features on sublanes (7 -> 8),
    # batch on lanes (B -> b_pad).  No separate zero-fill / update-slice pass.
    xT = jnp.pad(x.astype(jnp.bfloat16).T, ((0, 8 - F), (0, b_pad - B)))

    # Resident (constant index_map) weight/bias slabs: stay in VMEM across all
    # grid steps, no re-DMA.
    resident2 = lambda a: pl.BlockSpec(a.shape, lambda i: (0, 0))
    resident3 = lambda a: pl.BlockSpec(a.shape, lambda i: (0, 0, 0))

    cp_kwargs = dict(dimension_semantics=("parallel",))
    if tile_b >= 16384:
        # v5e's default scoped VMEM (~16 MiB) is too small for very large tiles.
        cp_kwargs["vmem_limit_bytes"] = 48 * 1024 * 1024

    out_t = pl.pallas_call(
        mlp_kernel,
        out_shape=jax.ShapeDtypeStruct((1, b_pad), jnp.float32),
        grid_spec=pltpu.PrefetchScalarGridSpec(
            num_scalar_prefetch=0,
            grid=grid,
            in_specs=[
                pl.BlockSpec((8, tile_b), lambda i: (0, i)),   # x tile (pipelined)
                resident2(w1p),
                resident3(w23p),
                resident2(w4p),
                resident3(bslab),
            ],
            out_specs=pl.BlockSpec((1, tile_b), lambda i: (0, i)),
        ),
        compiler_params=pltpu.CompilerParams(**cp_kwargs),
    )(xT, w1p, w23p, w4p, bslab)

    return out_t[:, :B].T  # (B, 1), matching nn.Linear(64, 1) output layout


def init_params(key):
    """Deterministic init mirroring torch.nn.Linear (uniform +/- 1/sqrt(fan_in)).

    Stored in torch convention: W is (out_features, in_features), b is (out,).
    """
    dims = [(7, 64), (64, 64), (64, 64), (64, 1)]
    params = []
    for fan_in, fan_out in dims:
        key, kw, kb = jax.random.split(key, 3)
        bound = 1.0 / jnp.sqrt(float(fan_in))
        w = jax.random.uniform(kw, (fan_out, fan_in), jnp.float32, -bound, bound)
        b = jax.random.uniform(kb, (fan_out,), jnp.float32, -bound, bound)
        params.append((w, b))
    return params


def reference_forward(x, params):
    """Pure-JAX reference mirroring the kernel numerics: bf16 operands with
    f32 accumulation for all four matmuls, f32 bias adds and ReLUs."""
    (w1, b1), (w2, b2), (w3, b3), (w4, b4) = params
    h = jnp.dot(x.astype(jnp.bfloat16), w1.T.astype(jnp.bfloat16),
                preferred_element_type=jnp.float32) + b1
    h = jnp.maximum(h, 0.0)
    h = jnp.dot(h.astype(jnp.bfloat16), w2.T.astype(jnp.bfloat16),
                preferred_element_type=jnp.float32) + b2
    h = jnp.maximum(h, 0.0)
    h = jnp.dot(h.astype(jnp.bfloat16), w3.T.astype(jnp.bfloat16),
                preferred_element_type=jnp.float32) + b3
    h = jnp.maximum(h, 0.0)
    return jnp.dot(h.astype(jnp.bfloat16), w4.T.astype(jnp.bfloat16),
                   preferred_element_type=jnp.float32) + b4


if __name__ == "__main__":
    key = jax.random.PRNGKey(0)
    key, kx = jax.random.split(key)
    # Small, lane-aligned test batch; the default tile_b clamps down and the
    # grid>=2 guard still exercises a 2-step batch grid at this size.
    B = 256
    x = jax.random.normal(kx, (B, 7), jnp.float32)

    params = init_params(key)

    out = mlp_forward(x, params)
    out = jax.block_until_ready(out)

    ref = reference_forward(x, params)
    assert out.shape == (B, 1)
    assert jnp.allclose(out, ref, atol=1e-2, rtol=1e-2), \
        float(jnp.max(jnp.abs(out - ref)))
    print("KERNEL_OK")
</pallas_src>

<mosaic_0001>
module attributes {stable_mosaic.version = 11 : i64} {
  func.func @mlp_kernel(%arg0: i32, %arg1: memref<8x128xbf16, #tpu.memory_space<vmem>>, %arg2: memref<64x8xbf16, #tpu.memory_space<vmem>>, %arg3: memref<2x64x64xbf16, #tpu.memory_space<vmem>>, %arg4: memref<8x64xbf16, #tpu.memory_space<vmem>>, %arg5: memref<4x64x1xf32, #tpu.memory_space<vmem>>, %arg6: memref<1x128xf32, #tpu.memory_space<vmem>>) attributes {dimension_semantics = [#tpu.dimension_semantics<parallel>], iteration_bounds = array<i64: 2>, scalar_prefetch = 0 : i64, scratch_operands = 0 : i64, tpu.core_type = #tpu.core_type<tc>, window_params = [{transform_indices = @transform_0, window_bounds = array<i64: 8, 128>}, {pipeline_mode = #tpu.pipeline_mode<synchronous>, transform_indices = @transform_1, window_bounds = array<i64: 64, 8>}, {pipeline_mode = #tpu.pipeline_mode<synchronous>, transform_indices = @transform_2, window_bounds = array<i64: 2, 64, 64>}, {pipeline_mode = #tpu.pipeline_mode<synchronous>, transform_indices = @transform_3, window_bounds = array<i64: 8, 64>}, {pipeline_mode = #tpu.pipeline_mode<synchronous>, transform_indices = @transform_4, window_bounds = array<i64: 4, 64, 1>}, {transform_indices = @transform_5, window_bounds = array<i64: 1, 128>}]} {
    %c0 = arith.constant 0 : index
    %c0_0 = arith.constant 0 : index
    %0 = vector.load %arg1[%c0, %c0_0] : memref<8x128xbf16, #tpu.memory_space<vmem>>, vector<8x128xbf16>
    %c0_1 = arith.constant 0 : index
    %c0_2 = arith.constant 0 : index
    %1 = vector.load %arg2[%c0_1, %c0_2] : memref<64x8xbf16, #tpu.memory_space<vmem>>, vector<64x8xbf16>
    %cst = arith.constant dense<0.000000e+00> : vector<64x128xf32>
    %2 = tpu.matmul %1, %0, %cst {dimension_numbers = #tpu.dot_dimension_numbers<[1], [0], [0], [1], [0, 0, 1, 1], [], []>} : vector<64x8xbf16>, vector<8x128xbf16>, vector<64x128xf32> -> vector<64x128xf32>
    %c0_3 = arith.constant 0 : index
    %c0_4 = arith.constant 0 : index
    %c0_5 = arith.constant 0 : index
    %3 = vector.load %arg5[%c0_3, %c0_4, %c0_5] : memref<4x64x1xf32, #tpu.memory_space<vmem>>, vector<1x64x1xf32>
    %4 = vector.shape_cast %3 : vector<1x64x1xf32> to vector<64x1xf32>
    %5 = vector.broadcast %4 : vector<64x1xf32> to vector<64x128xf32>
    %6 = arith.addf %2, %5 : vector<64x128xf32>
    %cst_6 = arith.constant 0.000000e+00 : f32
    %7 = vector.broadcast %cst_6 : f32 to vector<64x128xf32>
    %8 = arith.maximumf %6, %7 : vector<64x128xf32>
    %c0_7 = arith.constant 0 : index
    %c0_8 = arith.constant 0 : index
    %c0_9 = arith.constant 0 : index
    %9 = vector.load %arg3[%c0_7, %c0_8, %c0_9] : memref<2x64x64xbf16, #tpu.memory_space<vmem>>, vector<1x64x64xbf16>
    %10 = vector.shape_cast %9 : vector<1x64x64xbf16> to vector<64x64xbf16>
    %11 = arith.truncf %8 : vector<64x128xf32> to vector<64x128xbf16>
    %cst_10 = arith.constant dense<0.000000e+00> : vector<64x128xf32>
    %12 = tpu.matmul %10, %11, %cst_10 {dimension_numbers = #tpu.dot_dimension_numbers<[1], [0], [0], [1], [0, 0, 1, 1], [], []>} : vector<64x64xbf16>, vector<64x128xbf16>, vector<64x128xf32> -> vector<64x128xf32>
    %c1 = arith.constant 1 : index
    %c0_11 = arith.constant 0 : index
    %c0_12 = arith.constant 0 : index
    %13 = vector.load %arg5[%c1, %c0_11, %c0_12] : memref<4x64x1xf32, #tpu.memory_space<vmem>>, vector<1x64x1xf32>
    %14 = vector.shape_cast %13 : vector<1x64x1xf32> to vector<64x1xf32>
    %15 = vector.broadcast %14 : vector<64x1xf32> to vector<64x128xf32>
    %16 = arith.addf %12, %15 : vector<64x128xf32>
    %cst_13 = arith.constant 0.000000e+00 : f32
    %17 = vector.broadcast %cst_13 : f32 to vector<64x128xf32>
    %18 = arith.maximumf %16, %17 : vector<64x128xf32>
    %c1_14 = arith.constant 1 : index
    %c0_15 = arith.constant 0 : index
    %c0_16 = arith.constant 0 : index
    %19 = vector.load %arg3[%c1_14, %c0_15, %c0_16] : memref<2x64x64xbf16, #tpu.memory_space<vmem>>, vector<1x64x64xbf16>
    %20 = vector.shape_cast %19 : vector<1x64x64xbf16> to vector<64x64xbf16>
    %21 = arith.truncf %18 : vector<64x128xf32> to vector<64x128xbf16>
    %cst_17 = arith.constant dense<0.000000e+00> : vector<64x128xf32>
    %22 = tpu.matmul %20, %21, %cst_17 {dimension_numbers = #tpu.dot_dimension_numbers<[1], [0], [0], [1], [0, 0, 1, 1], [], []>} : vector<64x64xbf16>, vector<64x128xbf16>, vector<64x128xf32> -> vector<64x128xf32>
    %c2 = arith.constant 2 : index
    %c0_18 = arith.constant 0 : index
    %c0_19 = arith.constant 0 : index
    %23 = vector.load %arg5[%c2, %c0_18, %c0_19] : memref<4x64x1xf32, #tpu.memory_space<vmem>>, vector<1x64x1xf32>
    %24 = vector.shape_cast %23 : vector<1x64x1xf32> to vector<64x1xf32>
    %25 = vector.broadcast %24 : vector<64x1xf32> to vector<64x128xf32>
    %26 = arith.addf %22, %25 : vector<64x128xf32>
    %cst_20 = arith.constant 0.000000e+00 : f32
    %27 = vector.broadcast %cst_20 : f32 to vector<64x128xf32>
    %28 = arith.maximumf %26, %27 : vector<64x128xf32>
    %c0_21 = arith.constant 0 : index
    %c0_22 = arith.constant 0 : index
    %29 = vector.load %arg4[%c0_21, %c0_22] : memref<8x64xbf16, #tpu.memory_space<vmem>>, vector<8x64xbf16>
    %30 = arith.truncf %28 : vector<64x128xf32> to vector<64x128xbf16>
    %cst_23 = arith.constant dense<0.000000e+00> : vector<8x128xf32>
    %31 = tpu.matmul %29, %30, %cst_23 {dimension_numbers = #tpu.dot_dimension_numbers<[1], [0], [0], [1], [0, 0, 1, 1], [], []>} : vector<8x64xbf16>, vector<64x128xbf16>, vector<8x128xf32> -> vector<8x128xf32>
    %32 = vector.extract_strided_slice %31 {offsets = [0, 0], sizes = [1, 128], strides = [1, 1]} : vector<8x128xf32> to vector<1x128xf32>
    %c3 = arith.constant 3 : index
    %c0_24 = arith.constant 0 : index
    %c0_25 = arith.constant 0 : index
    %33 = vector.load %arg5[%c3, %c0_24, %c0_25] : memref<4x64x1xf32, #tpu.memory_space<vmem>>, vector<1x1x1xf32>
    %34 = vector.shape_cast %33 : vector<1x1x1xf32> to vector<1x1xf32>
    %35 = vector.broadcast %34 : vector<1x1xf32> to vector<1x128xf32>
    %36 = arith.addf %32, %35 : vector<1x128xf32>
    %c0_26 = arith.constant 0 : index
    %c0_27 = arith.constant 0 : index
    %37 = vector.load %arg6[%c0_26, %c0_27] : memref<1x128xf32, #tpu.memory_space<vmem>>, vector<1x128xf32>
    tpu.vector_store %arg6[%c0_26, %c0_27], %36 {strides = array<i32>} : memref<1x128xf32, #tpu.memory_space<vmem>>, vector<1x128xf32>,
    return
  }
  func.func @transform_0(%arg0: i32) -> (i32, i32) {
    %c0_i32 = arith.constant 0 : i32
    %c0_i32_0 = arith.constant 0 : i32
    return %c0_i32, %arg0 : i32, i32
  }
  func.func @transform_1(%arg0: i32) -> (i32, i32) {
    %c0_i32 = arith.constant 0 : i32
    %c0_i32_0 = arith.constant 0 : i32
    %c0_i32_1 = arith.constant 0 : i32
    return %c0_i32, %c0_i32_0 : i32, i32
  }
  func.func @transform_2(%arg0: i32) -> (i32, i32, i32) {
    %c0_i32 = arith.constant 0 : i32
    %c0_i32_0 = arith.constant 0 : i32
    %c0_i32_1 = arith.constant 0 : i32
    %c0_i32_2 = arith.constant 0 : i32
    return %c0_i32, %c0_i32_0, %c0_i32_1 : i32, i32, i32
  }
  func.func @transform_3(%arg0: i32) -> (i32, i32) {
    %c0_i32 = arith.constant 0 : i32
    %c0_i32_0 = arith.constant 0 : i32
    %c0_i32_1 = arith.constant 0 : i32
    return %c0_i32, %c0_i32_0 : i32, i32
  }
  func.func @transform_4(%arg0: i32) -> (i32, i32, i32) {
    %c0_i32 = arith.constant 0 : i32
    %c0_i32_0 = arith.constant 0 : i32
    %c0_i32_1 = arith.constant 0 : i32
    %c0_i32_2 = arith.constant 0 : i32
    return %c0_i32, %c0_i32_0, %c0_i32_1 : i32, i32, i32
  }
  func.func @transform_5(%arg0: i32) -> (i32, i32) {
    %c0_i32 = arith.constant 0 : i32
    %c0_i32_0 = arith.constant 0 : i32
    return %c0_i32, %arg0 : i32, i32
  }
}

</mosaic_0001>

<bundles_post_ra>
// kernel: tpu_custom_call.1
= control target key start
LH: loop header
LB: loop body
LE: loop exit
PB: predicated region body
PF: predicated region fallthrough
CT: control target
= control target key end

     0   :  { %10 = vsyncpa [#allocation3], 0  ;;  %s1166_s0 = inlined_call_operand.vmem [shape: bf16[8,256], index: 0, kind: input, shape index: {}]   ;;  %s1167_s1 = inlined_call_operand.vmem [shape: bf16[64,8], index: 1, kind: input, shape index: {}]   ;;  %s1168_s2 = inlined_call_operand.vmem [shape: bf16[2,64,64], index: 2, kind: input, shape index: {}]   ;;  %s1169_s3 = inlined_call_operand.vmem [shape: bf16[8,64], index: 3, kind: input, shape index: {}]   ;;  %s1170_s4 = inlined_call_operand.vmem [shape: f32[4,64,1], index: 4, kind: input, shape index: {}]   ;;  %s1171_s5 = inlined_call_operand.hbm [shape: f32[1,256], index: 5, kind: output, shape index: {}]  }
   0x1   :  { %12 = vsyncpa [#allocation3 + $0x1], 0  ;;  %s954_s18 = smov 0   ;;  %s956_s19 = smov 0  }
   0x2   :  { %s958_s20 = smov 0   ;;  %s960_s21 = smov 0  }
   0x3 LB: > { %s975_s22 = sadd.s32 4294967295, %s921_s21   ;;  %s711_s23 = sadd.s32 4294967294, %s921_s21   ;;  %s921_s21 = sphi %s960_s21, %s1177_s21   ;;  %s917_s20 = sphi %s958_s20, %s1176_s20   ;;  %s913_s19 = sphi %s956_s19, %s1175_s19   ;;  %s909_s18 = sphi %s954_s18, %s1174_s18  }
   0x4   : > { %s979_s24 = sadd.s32 1, %s921_s21   ;;  %s135_s25 = sadd.s32 1, %s917_s20 }
   0x5   : > { %s132_s26 = ssub.s32 %s921_s21, %s979_s24  ;;  %p145_p0 = scmp.ne.s32.totalorder %s917_s20, %s913_s19 }
   0x6   : > { %p133_p1 = scmp.eq.s32.totalorder %s132_s26, 0  ;;  %p146_p2 = scmp.eq.s32.totalorder %s975_s22, 1 }
   0x7   : > { %p151_p3 = scmp.ne.s32.totalorder %s913_s19, %s909_s18  ;;  %p152_p4 = scmp.eq.s32.totalorder %s711_s23, 1 }
   0x8   : > { %s990_s27 = scalar_select %p133_p1, %s917_s20, %s135_s25  }
   0x9   : > { %p992_p5 = por %p146_p2, %p145_p0  ;;  %p996_p6 = por %p152_p4, %p151_p3 }
   0xa   : > { %p714_p7 = scmp.ge.s32.totalorder %s921_s21, 1  ;;  %p189_p8 = scmp.lt.s32.totalorder %s921_s21, 3 }
   0xc   : > { %p190_p9 = pnand %p714_p7, %p189_p8 }
   0xd   : > { %p215_p10 = scmp.lt.s32.totalorder (!%p190_p9), %s975_s22, 1  ;;  %s213_s6 = sand.u32 (!%p190_p9), 1, %s913_s19  }
   0xe   : > { %193 = sbr.rel (%p190_p9) target bundleno = 783 (0x30f), region = 40 }
  0x13   : > { %v235_v0 = vld [vmem:[%s1170_s4 + $0x30] sm:$0xff]  ;;  %v923_v1 = vmov 0   ;;  %v233_v2 = vld [vmem:[%s1170_s4 + $0x20] sm:$0xff]  ;;  %s216_s9 = scalar_select %p215_p10, %s975_s22, 1  ;;  %vm310_vm0 = vcmask 1043456   ;;  %v236_v6 = vld [vmem:[%s1170_s4 + $0x38] sm:$0xff] }
  0x14   : > { %856 = vset.pattern.permute.xlu0 %v923_v1  ;;  %857 = vset.pattern.permute.xlu1 %v923_v1  ;;  %v804_v5 = vld [vmem:[%s1167_s1] sm:$0xff]  ;;  %v234_v7 = vld [vmem:[%s1170_s4 + $0x28] sm:$0xff]  ;;  %vm297_vm1 = vcmask 64512   ;;  %v231_v8 = vld [vmem:[%s1170_s4 + $0x10] sm:$0xff]  ;;  %vm432_vm2 = vcmask 523264  }
  0x15   : > { %269 = vperm.xlu0 %856, %v235_v0   ;;  %259 = vperm.xlu1 %857, %v233_v2   ;;  %s715_s10 = sshll.u32 %s216_s9, 2  ;;  %v229_v9 = vld [vmem:[%s1170_s4] sm:$0xff]  ;;  %v230_v10 = vld [vmem:[%s1170_s4 + $0x8] sm:$0xff]  ;;  %v232_v11 = vld [vmem:[%s1170_s4 + $0x18] sm:$0xff]  ;;  %s652_s9 = scalar_lea.hbm %s1171_s5, %s975_s22 }
  0x16   : > { %858 = vset.pattern.permute.xlu2 %v923_v1  ;;  %s218_s13 = scalar_lea.vmem %s1166_s0, %s715_s10  ;;  %v805_v12 = vld [vmem:[%s1167_s1 + $0x8] sm:$0xff]  ;;  %v743_v13 = vld [vmem:[%s1170_s4 + $0x78] sm:$0xff]  ;;  %v740_v14 = vld [vmem:[%s1170_s4 + $0x60] sm:$0xff]  ;;  %s214_s10 = scalar_lea.vmem [#allocation2], %s213_s6 }
  0x17   : > { %v220_v3 = vld [vmem:[%s218_s13] sm:$0xf]  ;;  %249 = vperm.xlu2 %858, %v231_v8   ;;  %v742_v15 = vld [vmem:[%s1170_s4 + $0x70] sm:$0xff]  ;;  %v739_v17 = vld [vmem:[%s1170_s4 + $0x58] sm:$0xff]  ;;  %s654_s11 = sshll.u32 %s214_s10, 4  ;;  %s656_s12 = sshll.u32 %s652_s9, 4  ;;  %s655_s11 = int_to_ptr.vmem [resolvable:$true] %s654_s11  ;;  %s657_s12 = int_to_ptr.hbm [resolvable:$true] %s656_s12 }
  0x18   : > { %v312_v4 = vsel %vm310_vm0, %v220_v3, 0  ;;  %v738_v16 = vld [vmem:[%s1170_s4 + $0x50] sm:$0xff]  ;;  %v741_v18 = vld [vmem:[%s1170_s4 + $0x68] sm:$0xff]  ;;  %v736_v22 = vld [vmem:[%s1170_s4 + $0x40] sm:$0xff]  ;;  %s644_s13 = scalar_lea.sflag [#allocation3], %s213_s6  ;;  %s873_s14 = sshra.s32 %s657_s12, 4  ;;  %s874_s14 = int_to_ptr.hbm [resolvable:$true] %s873_s14 }
  0x19   : > { %321 = vmatpush.bf16.msra.mxu0 %v312_v4  ;;  %v806_v19 = vld [vmem:[%s1167_s1 + $0x10] sm:$0xff]  ;;  %v737_v20 = vld [vmem:[%s1170_s4 + $0x48] sm:$0xff]  ;;  %v776_v23 = vld [vmem:[%s1170_s4 + $0xa0] sm:$0xff]  ;;  %s875_s15 = scalar_lea.hbm %s874_s14, 1  ;;  %s879_s22 = scalar_lea.hbm %s1171_s5, 2 }
  0x1a   : > { %v778_v21 = vld [vmem:[%s1170_s4 + $0xb0] sm:$0xff]  ;;  %v777_v24 = vld [vmem:[%s1170_s4 + $0xa8] sm:$0xff]  ;;  %v779_v25 = vld [vmem:[%s1170_s4 + $0xb8] sm:$0xff]  ;;  %p876_p11 = scmp.ne.s32.totalorder %s874_s14, %s875_s15  ;;  %p880_p0 = scmp.lt.s32.totalorder %s874_s14, %s1171_s5 }
  0x1b   : > { %v807_v26 = vld [vmem:[%s1167_s1 + $0x18] sm:$0xff]  ;;  %v772_v28 = vld [vmem:[%s1170_s4 + $0x80] sm:$0xff]  ;;  %v774_v29 = vld [vmem:[%s1170_s4 + $0x90] sm:$0xff]  ;;  %p881_p1 = scmp.lt.s32.totalorder %s879_s22, %s875_s15 }
  0x1c   : > { %732 = vmatmul.msk.bf16.vlgmr.msra.gmra.mxu0 %vm297_vm1, %v804_v5  ;;  %v775_v27 = vld [vmem:[%s1170_s4 + $0x98] sm:$0xff]  ;;  %v801_v30 = vld [vmem:[%s1170_s4 + $0xc0] sm:$0x1]  ;;  %v773_v31 = vld [vmem:[%s1170_s4 + $0x88] sm:$0xff]  ;;  %p877_p12 = pnand %p876_p11, %p992_p5 }
  0x1d   : > { %274 = vperm.xlu0 %856, %v236_v6   ;;  %264 = vperm.xlu1 %857, %v234_v7   ;;  %v808_v4 = vld [vmem:[%s1168_s2] sm:$0xff]  ;;  %v809_v5 = vld [vmem:[%s1168_s2 + $0x8] sm:$0xff]  ;;  %v810_v6 = vld [vmem:[%s1168_s2 + $0x10] sm:$0xff]  ;;  %p882_p2 = por %p881_p1, %p880_p0 }
  0x1e   : > { %v811_v7 = vld [vmem:[%s1168_s2 + $0x18] sm:$0xff]  ;;  %p878_p13 = pneg %p877_p12 }
  0x1f   : > { %254 = vperm.xlu2 %858, %v232_v11  }
  0x20   : > { %p883_p3 = pnand %p882_p2, %p878_p13 }
  0x25   : > { %239 = vperm.xlu0 %856, %v229_v9   ;;  %244 = vperm.xlu1 %857, %v230_v10  }
  0x27   : > { %404 = vperm.xlu2 %858, %v742_v15  }
  0x2c   : > { %733 = vmatmul.msk.bf16.gmra.mxu0 %vm297_vm1, %v805_v12 }
  0x2d   : > { %409 = vperm.xlu0 %856, %v743_v13   ;;  %394 = vperm.xlu1 %857, %v740_v14  }
  0x2f   : > { %399 = vperm.xlu2 %858, %v741_v18  }
  0x35   : > { %384 = vperm.xlu0 %856, %v738_v16   ;;  %389 = vperm.xlu1 %857, %v739_v17  }
  0x37   : > { %374 = vperm.xlu2 %858, %v736_v22  }
  0x3c   : > { %734 = vmatmul.msk.bf16.gmra.mxu0 %vm297_vm1, %v806_v19 }
  0x3d   : > { %379 = vperm.xlu0 %856, %v737_v20   ;;  %536 = vperm.xlu1 %857, %v778_v21  }
  0x3f   : > { %541 = vperm.xlu2 %858, %v779_v25  }
  0x45   : > { %526 = vperm.xlu0 %856, %v776_v23   ;;  %531 = vperm.xlu1 %857, %v777_v24  }
  0x47   : > { %516 = vperm.xlu2 %858, %v774_v29  }
  0x4c   : > { %735 = vmatmul.msk.bf16.gmra.mxu0 %vm297_vm1, %v807_v26 }
  0x4d   : > { %521 = vperm.xlu0 %856, %v775_v27   ;;  %506 = vperm.xlu1 %857, %v772_v28  }
  0x4f   : > { %511 = vperm.xlu2 %858, %v773_v31  }
  0x55   : > { %638 = vperm.xlu0 %856, %v801_v30  }
  0x71   : > { %v250_v41 = vpop.permute.xlu2 %249 }
  0x79   : > { %v255_v51 = vpop.permute.xlu2 %254 }
  0x81   : > { %v405_v15 = vpop.permute.xlu2 %404 }
  0x87   : > { %v260_v38 = vpop.permute.xlu1 %259  ;;  %v270_v39 = vpop.permute.xlu0 %269 }
  0x89   : > { %v400_v20 = vpop.permute.xlu2 %399 }
  0x8f   : > { %v265_v42 = vpop.permute.xlu1 %264  ;;  %v275_v43 = vpop.permute.xlu0 %274 }
  0x97   : > { %v245_v55 = vpop.permute.xlu1 %244  ;;  %v240_v58 = vpop.permute.xlu0 %239 }
  0x99   : > { %v323_v32 = vpop.f32.mrf.mxu0 }
  0x9a   : > { %v324_v62 = vadd.f32 %v323_v32, %v240_v58 }
  0x9c   : > { %v343_v2 = vmax.f32 %v324_v62, 0.0 }
  0x9f   : > { %v410_v14 = vpop.permute.xlu0 %409  ;;  %v395_v17 = vpop.permute.xlu1 %394 }
  0xa1   : > { %v325_v33 = vpop.f32.mrf.mxu0 }
  0xa2   : > { %v326_v59 = vadd.f32 %v325_v33, %v245_v55 }
  0xa4   : > { %v344_v0 = vmax.f32 %v326_v59, 0.0 }
  0xa6   : > { %v359_v3 = vpack.c.bf16 %v344_v0, %v343_v2 }
  0xa7   : > { %v385_v18 = vpop.permute.xlu0 %384  ;;  %v390_v27 = vpop.permute.xlu1 %389 }
  0xa9   : > { %v328_v34 = vpop.f32.mrf.mxu0 }
  0xaa   : > { %v329_v56 = vadd.f32 %v328_v34, %v250_v41 }
  0xac   : > { %v345_v63 = vmax.f32 %v329_v56, 0.0 }
  0xaf   : > { %v380_v33 = vpop.permute.xlu0 %379  ;;  %v537_v55 = vpop.permute.xlu1 %536 }
  0xb1   : > { %v330_v35 = vpop.f32.mrf.mxu0 }
  0xb2   : > { %v331_v52 = vadd.f32 %v330_v35, %v255_v51 }
  0xb4   : > { %v346_v60 = vmax.f32 %v331_v52, 0.0 }
  0xb6   : > { %v360_v1 = vpack.c.bf16 %v346_v60, %v345_v63 }
  0xb7   : > { %v532_v60 = vpop.permute.xlu1 %531 }
  0xb9   : > { %v333_v36 = vpop.f32.mrf.mxu0 }
  0xba   : > { %v334_v48 = vadd.f32 %v333_v36, %v260_v38 }
  0xbc   : > { %v347_v57 = vmax.f32 %v334_v48, 0.0 }
  0xc1   : > { %v335_v37 = vpop.f32.mrf.mxu0 }
  0xc2   : > { %v336_v46 = vadd.f32 %v335_v37, %v265_v42  ;;  %v375_v37 = vpop.permute.xlu2 %374 }
  0xc4   : > { %v348_v53 = vmax.f32 %v336_v46, 0.0  ;;  %v814_v46 = vld [vmem:[%s1168_s2 + $0x30] sm:$0xff] }
  0xc6   : > { %v361_v61 = vpack.c.bf16 %v348_v53, %v347_v57  ;;  %v527_v57 = vpop.permute.xlu0 %526 }
  0xc9   : > { %v338_v40 = vpop.f32.mrf.mxu0 }
  0xca   : > { %v339_v44 = vadd.f32 %v338_v40, %v270_v39 }
  0xcc   : > { %v349_v49 = vmax.f32 %v339_v44, 0.0  ;;  %v812_v44 = vld [vmem:[%s1168_s2 + $0x20] sm:$0xff] }
  0xd1   : > { %v340_v45 = vpop.f32.mrf.mxu0 }
  0xd2   : > { %v341_v47 = vadd.f32 %v340_v45, %v275_v43  ;;  %v813_v45 = vld [vmem:[%s1168_s2 + $0x28] sm:$0xff] }
  0xd4   : > { %v350_v50 = vmax.f32 %v341_v47, 0.0  ;;  %v815_v47 = vld [vmem:[%s1168_s2 + $0x38] sm:$0xff] }
  0xd6   : > { %v362_v54 = vpack.c.bf16 %v350_v50, %v349_v49 }
  0xd8   : > { %449 = vmatpush.bf16.msra.mxu1 %v362_v54  ;;  %v542_v54 = vpop.permute.xlu2 %541 }
  0xdc   : > { %450 = vmatpush.bf16.msra.mxu1 %v361_v61 }
  0xe0   : > { %451 = vmatpush.bf16.msra.mxu1 %v360_v1  ;;  %v517_v58 = vpop.permute.xlu2 %516 }
  0xe4   : > { %452 = vmatpush.bf16.msra.mxu1 %v359_v3  ;;  %v522_v3 = vpop.permute.xlu0 %521 }
  0xe7   : > { %760 = vmatmul.msk.bf16.vlgmr.msra.gmra.mxu1 %vm432_vm2, %v808_v4 }
  0xf7   : > { %761 = vmatmul.msk.bf16.gmra.mxu1 %vm432_vm2, %v809_v5 }
 0x107   : > { %762 = vmatmul.msk.bf16.gmra.mxu1 %vm432_vm2, %v810_v6 }
 0x117   : > { %763 = vmatmul.msk.bf16.gmra.mxu1 %vm432_vm2, %v811_v7 }
 0x164   : > { %v454_v8 = vpop.f32.mrf.mxu1 }
 0x165   : > { %v455_v38 = vadd.f32 %v454_v8, %v375_v37 }
 0x167   : > { %v474_v42 = vmax.f32 %v455_v38, 0.0 }
 0x16c   : > { %v456_v9 = vpop.f32.mrf.mxu1 }
 0x16d   : > { %v457_v34 = vadd.f32 %v456_v9, %v380_v33  ;;  %v512_v9 = vpop.permute.xlu2 %511 }
 0x16f   : > { %v475_v40 = vmax.f32 %v457_v34, 0.0 }
 0x171   : > { %v491_v43 = vpack.c.bf16 %v475_v40, %v474_v42 }
 0x174   : > { %v459_v10 = vpop.f32.mrf.mxu1 }
 0x175   : > { %v460_v31 = vadd.f32 %v459_v10, %v385_v18 }
 0x177   : > { %v476_v39 = vmax.f32 %v460_v31, 0.0 }
 0x17c   : > { %v461_v11 = vpop.f32.mrf.mxu1 }
 0x17d   : > { %v462_v28 = vadd.f32 %v461_v11, %v390_v27 }
 0x17f   : > { %v477_v35 = vmax.f32 %v462_v28, 0.0 }
 0x181   : > { %v492_v41 = vpack.c.bf16 %v477_v35, %v476_v39 }
 0x184   : > { %v464_v12 = vpop.f32.mrf.mxu1 }
 0x185   : > { %v465_v24 = vadd.f32 %v464_v12, %v395_v17 }
 0x187   : > { %v478_v32 = vmax.f32 %v465_v24, 0.0 }
 0x18c   : > { %v466_v13 = vpop.f32.mrf.mxu1 }
 0x18d   : > { %v467_v22 = vadd.f32 %v466_v13, %v400_v20  ;;  %v507_v13 = vpop.permute.xlu1 %506  ;;  %v613_v20 = vld [vmem:[%s1169_s3] sm:$0xf] }
 0x18f   : > { %v479_v29 = vmax.f32 %v467_v22, 0.0 }
 0x191   : > { %v493_v36 = vpack.c.bf16 %v479_v29, %v478_v32 }
 0x194   : > { %v469_v16 = vpop.f32.mrf.mxu1 }
 0x195   : > { %v470_v19 = vadd.f32 %v469_v16, %v405_v15 }
 0x197   : > { %v480_v25 = vmax.f32 %v470_v19, 0.0 }
 0x19c   : > { %v471_v21 = vpop.f32.mrf.mxu1 }
 0x19d   : > { %v472_v23 = vadd.f32 %v471_v21, %v410_v14  ;;  %v639_v21 = vpop.permute.xlu0 %638 }
 0x19f   : > { %v481_v26 = vmax.f32 %v472_v23, 0.0 }
 0x1a1   : > { %v494_v30 = vpack.c.bf16 %v481_v26, %v480_v25 }
 0x1a3   : > { %580 = vmatpush.bf16.msra.mxu2 %v494_v30 }
 0x1a7   : > { %581 = vmatpush.bf16.msra.mxu2 %v493_v36 }
 0x1ab   : > { %582 = vmatpush.bf16.msra.mxu2 %v492_v41 }
 0x1af   : > { %583 = vmatpush.bf16.msra.mxu2 %v491_v43 }
 0x1b2   : > { %796 = vmatmul.msk.bf16.vlgmr.msra.gmra.mxu2 %vm432_vm2, %v812_v44 }
 0x1c2   : > { %797 = vmatmul.msk.bf16.gmra.mxu2 %vm432_vm2, %v813_v45 }
 0x1d2   : > { %798 = vmatmul.msk.bf16.gmra.mxu2 %vm432_vm2, %v814_v46 }
 0x1e2   : > { %799 = vmatmul.msk.bf16.gmra.mxu2 %vm432_vm2, %v815_v47 }
 0x235   : > { %v585_v48 = vpop.f32.mrf.mxu2 }
 0x236   : > { %v586_v14 = vadd.f32 %v585_v48, %v507_v13 }
 0x238   : > { %v605_v18 = vmax.f32 %v586_v14, 0.0 }
 0x23d   : > { %v587_v49 = vpop.f32.mrf.mxu2 }
 0x23e   : > { %v588_v10 = vadd.f32 %v587_v49, %v512_v9 }
 0x240   : > { %v606_v16 = vmax.f32 %v588_v10, 0.0 }
 0x242   : > { %v614_v19 = vpack.c.bf16 %v606_v16, %v605_v18 }
 0x245   : > { %v590_v50 = vpop.f32.mrf.mxu2 }
 0x246   : > { %v591_v7 = vadd.f32 %v590_v50, %v517_v58 }
 0x248   : > { %v607_v15 = vmax.f32 %v591_v7, 0.0 }
 0x24d   : > { %v592_v51 = vpop.f32.mrf.mxu2 }
 0x24e   : > { %v593_v4 = vadd.f32 %v592_v51, %v522_v3 }
 0x250   : > { %v608_v11 = vmax.f32 %v593_v4, 0.0 }
 0x252   : > { %v615_v17 = vpack.c.bf16 %v608_v11, %v607_v15 }
 0x255   : > { %v595_v52 = vpop.f32.mrf.mxu2 }
 0x256   : > { %v596_v0 = vadd.f32 %v595_v52, %v527_v57 }
 0x258   : > { %v609_v8 = vmax.f32 %v596_v0, 0.0 }
 0x25d   : > { %v597_v53 = vpop.f32.mrf.mxu2 }
 0x25e   : > { %v598_v62 = vadd.f32 %v597_v53, %v532_v60 }
 0x260   : > { %v610_v5 = vmax.f32 %v598_v62, 0.0 }
 0x262   : > { %v616_v12 = vpack.c.bf16 %v610_v5, %v609_v8 }
 0x265   : > { %v600_v56 = vpop.f32.mrf.mxu2 }
 0x266   : > { %v601_v59 = vadd.f32 %v600_v56, %v537_v55 }
 0x268   : > { %v611_v1 = vmax.f32 %v601_v59, 0.0 }
 0x26d   : > { %v602_v61 = vpop.f32.mrf.mxu2 }
 0x26e   : > { %v603_v63 = vadd.f32 %v602_v61, %v542_v54 }
 0x270   : > { %v612_v2 = vmax.f32 %v603_v63, 0.0 }
 0x272   : > { %v617_v6 = vpack.c.bf16 %v612_v2, %v611_v1 }
 0x274   : > { %625 = vmatpush.bf16.msra.mxu3 %v617_v6 }
 0x278   : > { %626 = vmatpush.bf16.msra.mxu3 %v616_v12 }
 0x27c   : > { %627 = vmatpush.bf16.msra.mxu3 %v615_v17 }
 0x280   : > { %628 = vmatpush.bf16.msra.mxu3 %v614_v19 }
 0x283   : > { %800 = vmatmul.msk.bf16.vlgmr.msra.gmra.mxu3 %vm432_vm2, %v613_v20 }
 0x306   : > { %v630_v22 = vpop.f32.mrf.mxu3 }
 0x307   : > { %v641_v23 = vadd.f32 %v639_v21, %v630_v22 }
 0x309   : > { %642 = vst [vmem:[%s214_s10] sm:$0x1] %v641_v23 }
 0x30a   : > { %886 = shalt.err (!%p883_p3)
}
 0x30b   : > { %816 = dma.vmem_to_hbm [thread:$0]  (%p992_p5), %s655_s11, 16, %s657_s12, %s644_s13  }
 0x30e   : > { %v632_v24 = vpop.f32.mrf.mxu3 }
 0x30f PF: > { %p822_p4 = scmp.ge.s32.totalorder %s921_s21, 2  ;;  %s668_s26 = sand.u32 1, %s909_s18  }
 0x310   : > { %s669_s30 = scalar_lea.sflag [#allocation3], %s668_s26 }
 0x311   : > { %p819_p7 = pnand %p822_p4, %p996_p6 }
 0x313   : > { %p820_p8 = pneg %p819_p7 }
 0x315   : > { %904 = dma.done.wait (%p820_p8), %s669_s30, 16  }
 0x316   : > { %906 = vsyncadd (%p820_p8), %s669_s30, 4294967280  ;;  %p15_p9 = scmp.ge.s32.totalorder %s979_s24, 4   ;;  %s1174_s18 = smov %s913_s19 }
 0x317   : > { %s1175_s19 = smov %s917_s20  ;;  %s1176_s20 = smov %s990_s27 }
 0x318   : > { %s1177_s21 = smov %s979_s24  ;;  %17 = sbr.rel (!%p15_p9) target bundleno = 3 (0x3), region = 79 }
 0x31d   :  { %674 = vsyncpa [#allocation3], 1 }
 0x31e   :  { %676 = vsyncpa [#allocation3 + $0x1], 1 }

</bundles_post_ra>
